<compile_context>
chip_gen: v6e
topology: v6e:2x2x1
jax: 0.10.0
libtpu: 0.0.40
codegen_flags: <defaults>
</compile_context>

<pallas_src>
import functools

import jax
import jax.numpy as jnp
from jax import lax
from jax.experimental import pallas as pl
from jax.experimental.pallas import tpu as pltpu

_MIB = 1024 * 1024
_SUBLANE = {4: 8, 2: 16, 1: 32}  # sublane multiple per itemsize


def _round_up(x, m):
    return ((x + m - 1) // m) * m


def _device_profile():
    """(target_block_bytes, num_tensorcores, vmem_limit_cap) for this backend."""
    try:
        kind = jax.devices()[0].device_kind.lower()
    except Exception:
        kind = ""
    if "v7" in kind or "7x" in kind:
        # ~3.2 TB/s HBM per TC, 64 MiB physical VMEM, 2 TensorCores per chip.
        return 12 * _MIB, 2, 56 * _MIB
    if "v6" in kind:
        # 1.4 TB/s HBM, 128 MiB physical VMEM (32 MiB default scoped).
        return 8 * _MIB, 1, 100 * _MIB
    if "v5p" in kind or "v4" in kind:
        return 8 * _MIB, 2, 100 * _MIB
    if "v5" in kind:
        # v5e: 16 MiB default scoped VMEM -- raised explicitly via vmem_limit_bytes.
        return 6 * _MIB, 1, 100 * _MIB
    return 4 * _MIB, 1, 48 * _MIB


def _mean_pool_kernel(d_ref, out_ref, acc_ref, *, inv_t, fold, out_c,
                      t_eff, tt, chunk, needs_mask):
    # d_ref: (bb, tt, cb) block.  out_ref: (bb, out_c).  acc_ref: (bb, cb) f32.
    k = pl.program_id(2)

    @pl.when(k == 0)
    def _init():
        acc_ref[...] = jnp.zeros_like(acc_ref)

    def _accumulate(start, rows):
        d = d_ref[:, pl.ds(start, rows), :]
        if needs_mask:
            t_idx = (k * tt + start) + lax.broadcasted_iota(jnp.int32, (rows, 1), 0)
            d = jnp.where(t_idx < t_eff, d, jnp.zeros((), d.dtype))
        # Widening reduce straight into the f32 accumulator; chunking bounds the
        # size of any f32 intermediate (no full f32 copy of a bf16 block).
        acc_ref[...] += jnp.sum(d, axis=1, dtype=jnp.float32)

    n_full = tt // chunk
    rem = tt - n_full * chunk
    if n_full == 1 and rem == 0:
        _accumulate(0, tt)
    else:
        def _body(i, carry):
            _accumulate(pl.multiple_of(i * chunk, chunk), chunk)
            return carry

        lax.fori_loop(0, n_full, _body, 0)
        if rem:
            _accumulate(n_full * chunk, rem)

    @pl.when(k == pl.num_programs(2) - 1)
    def _finalize():
        if fold > 1:
            # Fold the `fold` time sub-groups packed along the lane dimension.
            total = acc_ref[:, 0:out_c]
            for j in range(1, fold):
                total = total + acc_ref[:, j * out_c:(j + 1) * out_c]
        else:
            total = acc_ref[...]
        out_ref[...] = (total * inv_t).astype(out_ref.dtype)


def mean_pool(logits, decision, pooldim=1):
    """Pallas MeanPool.forward(logits, decision): mean of decision over axis 1."""
    assert pooldim == 1, "kernel implements the default pooldim=1"
    del logits  # unused by the module's forward; never DMA'd
    B, T, C = decision.shape
    dtype = decision.dtype
    itemsize = jnp.dtype(dtype).itemsize
    sub = _SUBLANE.get(itemsize, 8)

    target, num_tc, vmem_cap = _device_profile()

    # ---- lane densification: fold f consecutive time steps into the lane dim ----
    fold = 1
    if 0 < C < 128:
        f = 128 // C
        if f > 1 and T % f == 0:
            fold = f
    t_eff, c_eff = T // fold, C * fold
    work = decision.reshape(B, t_eff, c_eff) if fold > 1 else decision

    # ---- tile selection with *padded* VMEM accounting ----
    cp = _round_up(c_eff, 128)                       # lane-padded channels
    slab = _round_up(t_eff, sub) * cp * itemsize     # padded full-time per-batch slab

    if 8 * slab <= target or B * slab <= target:
        # Full time axis in one block; tile only the batch axis.
        bb = min(B, max(1, target // slab))
        if bb < B:
            bb = max(8, (bb // 8) * 8)               # output-block sublane constraint
        elif B > 8 and num_tc > 1:
            # Keep >= num_tc batch blocks so both TensorCores get work.
            bb = max(8, (pl.cdiv(B, num_tc) // 8) * 8)
        tt = t_eff
    else:
        bb = B if B <= 8 else 8
        budget_tt = max(sub, (target // (bb * cp * itemsize)) // sub * sub)
        if t_eff <= budget_tt:
            tt = t_eff
        else:
            # Prefer a clean divisor of t_eff near the budget; otherwise take the
            # budget-sized tile and mask the ragged tail in-kernel.
            divs = [d for d in range(sub, budget_tt + 1, sub) if t_eff % d == 0]
            tt = max(divs) if divs and 2 * max(divs) >= budget_tt else budget_tt

    nb = pl.cdiv(B, bb)
    nt = pl.cdiv(t_eff, tt)
    needs_mask = (t_eff % tt) != 0

    # ---- channel split so 2-TC chips shard when the batch axis has one block ----
    nc = 1
    if num_tc > 1 and nb < num_tc and fold == 1 and c_eff % (128 * num_tc) == 0:
        nc = num_tc
    cb = c_eff // nc
    out_c = C if fold > 1 else cb

    # In-kernel chunk rows for the widening reduce (bounds f32 temporaries).
    chunk = min(tt, max(sub, (_MIB // max(1, bb * cp * 4)) // sub * sub))

    # ---- explicit scoped-VMEM limit from the padded footprint ----
    in_block = bb * _round_up(tt, sub) * _round_up(cb, 128) * itemsize
    out_block = _round_up(bb, 8) * _round_up(out_c, 128) * itemsize
    acc_block = _round_up(bb, 8) * _round_up(cb, 128) * 4
    tmp_block = _round_up(bb, 8) * _round_up(chunk, sub) * _round_up(cb, 128) * 4
    vmem_need = 2 * in_block + 2 * out_block + acc_block + 2 * tmp_block + 4 * _MIB
    vmem_limit = int(min(max(vmem_need, 32 * _MIB), vmem_cap))

    kernel = functools.partial(
        _mean_pool_kernel, inv_t=1.0 / T, fold=fold, out_c=out_c,
        t_eff=t_eff, tt=tt, chunk=chunk, needs_mask=needs_mask)

    return pl.pallas_call(
        kernel,
        out_shape=jax.ShapeDtypeStruct((B, C), dtype),
        grid_spec=pltpu.PrefetchScalarGridSpec(
            num_scalar_prefetch=0,
            grid=(nb, nc, nt),
            in_specs=[pl.BlockSpec((bb, tt, cb), lambda b, c, k: (b, k, c))],
            out_specs=pl.BlockSpec((bb, out_c), lambda b, c, k: (b, c)),
            scratch_shapes=[pltpu.VMEM((bb, cb), jnp.float32)],
        ),
        compiler_params=pltpu.CompilerParams(
            dimension_semantics=("parallel", "parallel", "arbitrary"),
            vmem_limit_bytes=vmem_limit,
        ),
        cost_estimate=pl.CostEstimate(
            flops=B * T * C,
            transcendentals=0,
            bytes_accessed=B * T * C * itemsize + B * C * itemsize,
        ),
    )(work)


if __name__ == "__main__":
    # Small deterministic example consistent with the forward signature.
    B, T, C = 2, 8, 32
    key = jax.random.PRNGKey(0)
    k1, k2 = jax.random.split(key)
    logits = jax.random.normal(k1, (B, T, C), dtype=jnp.float32)
    decision = jax.random.uniform(k2, (B, T, C), dtype=jnp.float32)

    out = jax.jit(mean_pool)(logits, decision)
    out = jax.block_until_ready(out)

    ref = jnp.mean(decision, axis=1)   # torch.mean(decision, dim=1)
    assert out.shape == (B, C)
    assert jnp.allclose(out, ref, atol=1e-5, rtol=1e-5), "mismatch vs reference"

    print("KERNEL_OK")
</pallas_src>

<mosaic_0001>
module attributes {stable_mosaic.version = 11 : i64} {
  func.func @_mean_pool_kernel(%arg0: i32, %arg1: i32, %arg2: i32, %arg3: memref<2x2x128xf32, #tpu.memory_space<vmem>>, %arg4: memref<2x32xf32, #tpu.memory_space<vmem>>, %arg5: memref<2x128xf32, #tpu.memory_space<vmem>>) attributes {dimension_semantics = [#tpu.dimension_semantics<parallel>, #tpu.dimension_semantics<parallel>, #tpu.dimension_semantics<arbitrary>], iteration_bounds = array<i64: 1, 1, 1>, scalar_prefetch = 0 : i64, scratch_operands = 1 : i64, tpu.core_type = #tpu.core_type<tc>, window_params = [{transform_indices = @transform_0, window_bounds = array<i64: 2, 2, 128>}, {transform_indices = @transform_1, window_bounds = array<i64: 2, 32>}]} {
    %c0_i32 = arith.constant 0 : i32
    %0 = arith.cmpi eq, %arg2, %c0_i32 : i32
    %1 = arith.extui %0 : i1 to i32
    %c0_i32_0 = arith.constant 0 : i32
    %2 = arith.cmpi ne, %1, %c0_i32_0 : i32
    scf.if %2 {
      %cst_9 = arith.constant 0.000000e+00 : f32
      %11 = vector.broadcast %cst_9 : f32 to vector<2x128xf32>
      %c0_10 = arith.constant 0 : index
      %c0_11 = arith.constant 0 : index
      %12 = vector.load %arg5[%c0_10, %c0_11] : memref<2x128xf32, #tpu.memory_space<vmem>>, vector<2x128xf32>
      tpu.vector_store %arg5[%c0_10, %c0_11], %11 {strides = array<i32>} : memref<2x128xf32, #tpu.memory_space<vmem>>, vector<2x128xf32>,
    } else {
    }
    %c0 = arith.constant 0 : index
    %c0_1 = arith.constant 0 : index
    %c0_2 = arith.constant 0 : index
    %3 = vector.load %arg3[%c0, %c0_1, %c0_2] : memref<2x2x128xf32, #tpu.memory_space<vmem>>, vector<2x2x128xf32>
    %c0_3 = arith.constant 0 : index
    %c0_4 = arith.constant 0 : index
    %4 = vector.load %arg5[%c0_3, %c0_4] : memref<2x128xf32, #tpu.memory_space<vmem>>, vector<2x128xf32>
    %cst = arith.constant dense<0.000000e+00> : vector<2x128xf32>
    %5 = vector.multi_reduction <add>, %3, %cst [1] : vector<2x2x128xf32> to vector<2x128xf32>
    %6 = arith.addf %4, %5 : vector<2x128xf32>
    %c0_5 = arith.constant 0 : index
    %c0_6 = arith.constant 0 : index
    %7 = vector.load %arg5[%c0_5, %c0_6] : memref<2x128xf32, #tpu.memory_space<vmem>>, vector<2x128xf32>
    tpu.vector_store %arg5[%c0_5, %c0_6], %6 {strides = array<i32>} : memref<2x128xf32, #tpu.memory_space<vmem>>, vector<2x128xf32>,
    %c0_i32_7 = arith.constant 0 : i32
    %8 = arith.cmpi eq, %arg2, %c0_i32_7 : i32
    %9 = arith.extui %8 : i1 to i32
    %c0_i32_8 = arith.constant 0 : i32
    %10 = arith.cmpi ne, %9, %c0_i32_8 : i32
    scf.if %10 {
      %c0_9 = arith.constant 0 : index
      %c0_10 = arith.constant 0 : index
      %11 = vector.load %arg5[%c0_9, %c0_10] : memref<2x128xf32, #tpu.memory_space<vmem>>, vector<2x32xf32>
      %c0_11 = arith.constant 0 : index
      %c32 = arith.constant 32 : index
      %12 = vector.load %arg5[%c0_11, %c32] : memref<2x128xf32, #tpu.memory_space<vmem>>, vector<2x32xf32>
      %13 = arith.addf %11, %12 : vector<2x32xf32>
      %c0_12 = arith.constant 0 : index
      %c64 = arith.constant 64 : index
      %14 = vector.load %arg5[%c0_12, %c64] : memref<2x128xf32, #tpu.memory_space<vmem>>, vector<2x32xf32>
      %15 = arith.addf %13, %14 : vector<2x32xf32>
      %c0_13 = arith.constant 0 : index
      %c96 = arith.constant 96 : index
      %16 = vector.load %arg5[%c0_13, %c96] : memref<2x128xf32, #tpu.memory_space<vmem>>, vector<2x32xf32>
      %17 = arith.addf %15, %16 : vector<2x32xf32>
      %cst_14 = arith.constant 1.250000e-01 : f32
      %18 = vector.broadcast %cst_14 : f32 to vector<2x32xf32>
      %19 = arith.mulf %17, %18 : vector<2x32xf32>
      %c0_15 = arith.constant 0 : index
      %c0_16 = arith.constant 0 : index
      %20 = vector.load %arg4[%c0_15, %c0_16] : memref<2x32xf32, #tpu.memory_space<vmem>>, vector<2x32xf32>
      tpu.vector_store %arg4[%c0_15, %c0_16], %19 {strides = array<i32>} : memref<2x32xf32, #tpu.memory_space<vmem>>, vector<2x32xf32>,
    } else {
    }
    return
  }
  func.func @transform_0(%arg0: i32, %arg1: i32, %arg2: i32) -> (i32, i32, i32) {
    %c0_i32 = arith.constant 0 : i32
    return %arg0, %arg2, %arg1 : i32, i32, i32
  }
  func.func @transform_1(%arg0: i32, %arg1: i32, %arg2: i32) -> (i32, i32) {
    %c0_i32 = arith.constant 0 : i32
    return %arg0, %arg1 : i32, i32
  }
}

</mosaic_0001>

<bundles_post_ra>
// kernel: mean_pool.1
= control target key start
LH: loop header
LB: loop body
LE: loop exit
PB: predicated region body
PF: predicated region fallthrough
CT: control target
= control target key end

     0   :  { %vm17_vm0 = vcmask 1041408   ;;  %v100_v2 = vmov 0.0   ;;  %s124_s0 = inlined_call_operand.vmem [shape: f32[2,2,128], index: 0, kind: input, shape index: {}]   ;;  %s125_s1 = inlined_call_operand.hbm [shape: f32[2,32], index: 1, kind: output, shape index: {}]  }
   0x1   :  { %v14_v0 = vld [vmem:[%s124_s0] sm:$0x3]  ;;  %v15_v1 = vld [vmem:[%s124_s0 + $0x2] sm:$0x3]  ;;  %13 = vst [vmem:[#allocation2] sm:$0x3] %v100_v2 }
   0x2   :  { %v18_v3 = vsel %vm17_vm0, %v14_v0, 0.0  ;;  %v25_v4 = vsel %vm17_vm0, %v15_v1, 0.0 }
   0x3   :  { %v19_v5 = vrot.slane %v18_v3, 4  ;;  %v26_v6 = vrot.slane %v25_v4, 4 }
   0x4   :  { %6 = vsyncpa [#allocation4], 0  ;;  %vm34_vm1 = vcmask 1041409   ;;  %s101_s0 = smov 96   ;;  %s102_s10 = smov 32   ;;  %vm57_vm2 = vcmask 254976  }
   0x5   :  { %v20_v7 = vadd.f32 %v19_v5, %v18_v3  ;;  %v27_v8 = vadd.f32 %v26_v6, %v25_v4  ;;  %s103_s11 = smov 64   ;;  %s104_s12 = smov [#allocation3]  }
   0x6   :  { %s65_s13 = sshll.u32 %s104_s12, 4  ;;  %s66_s13 = int_to_ptr.vmem [resolvable:$true] %s65_s13 }
   0x7   :  { %v21_v9 = vrot.slane %v20_v7, 2  ;;  %v28_v10 = vrot.slane %v27_v8, 2  ;;  %s78_s14 = scalar_lea.vmem %s66_s13, 32  ;;  %p83_p1 = scmp.lt.s32.totalorder %s66_s13, %s66_s13 }
   0x8   :  { %v16_v15 = vld [vmem:[#allocation2] sm:$0x3]  ;;  %p79_p0 = scmp.ne.s32.totalorder %s66_s13, %s78_s14  ;;  %p84_p2 = scmp.lt.s32.totalorder %s78_s14, %s78_s14 }
   0x9   :  { %v22_v11 = vadd.f32 %v21_v9, %v20_v7  ;;  %v29_v12 = vadd.f32 %v28_v10, %v27_v8 }
   0xa   :  { %p85_p3 = por %p84_p2, %p83_p1 }
   0xb   :  { %v23_v13 = vrot.slane %v22_v11, 1  ;;  %v30_v14 = vrot.slane %v29_v12, 1 }
   0xc   :  { %p86_p4 = pnand %p85_p3, %p79_p0 }
   0xd   :  { %v24_v16 = vadd.f32 %v23_v13, %v22_v11  ;;  %v31_v17 = vadd.f32 %v30_v14, %v29_v12 }
   0xf   :  { %v35_v18 = vsel %vm34_vm1, %v31_v17, %v24_v16 }
  0x10   :  { %v37_v19 = vadd.f32 %v35_v18, %v16_v15 }
  0x12   :  { %38 = vst [vmem:[#allocation2] sm:$0x3] %v37_v19 }
  0x19   :  { %v42_v20 = vld [vmem:[#allocation2] sm:$0x3] }
  0x1a   :  { %44 = vrot.lane.b32.xlu0 %v42_v20, %s101_s0  ;;  %52 = vrot.lane.b32.xlu1 %v42_v20, %s102_s10 }
  0x1e   :  { %48 = vrot.lane.b32.xlu0 %v42_v20, %s103_s11 }
  0x8c   :  { %v45_v21 = vpop.permute.xlu0 %44  ;;  %v53_v24 = vpop.permute.xlu1 %52 }
  0x8d   :  { %v47_v22 = vadd.f32 %v45_v21, %v42_v20 }
  0x90   :  { %v49_v23 = vpop.permute.xlu0 %48 }
  0x91   :  { %v51_v25 = vadd.f32 %v49_v23, %v47_v22 }
  0x93   :  { %v55_v26 = vadd.f32 %v53_v24, %v51_v25 }
  0x95   :  { %v56_v27 = vmul.f32 0.125, %v55_v26 }
  0x97   :  { %58 = vst.msk [vmem:[#allocation3] sm:$0x3] %vm57_vm2, %v56_v27 }
  0x98   :  { %89 = shalt.err (!%p86_p4)
}
  0x99   :  { %68 = dma.vmem_to_hbm [thread:$0]  %s66_s13, 32, %s125_s1, [#allocation4]  }
  0x9a   :  { %98 = dma.done.wait [#allocation4], 32  }
  0x9b   :  { %99 = vsyncadd [#allocation4], 4294967264 }
  0x9c   :  { %72 = vsyncpa [#allocation4], 1 }

</bundles_post_ra>
